<compile_context>
chip_gen: v7x
topology: tpu7x:2x2x1
jax: 0.10.0
libtpu: 0.0.40
codegen_flags: <defaults>
</compile_context>

<pallas_src>
import jax
import jax.numpy as jnp
from jax.experimental import pallas as pl
from jax.experimental.pallas import tpu as pltpu

_LANE_WIDE = 512                 # preferred lane-dense last dim (multiple of 128)
_LANE_MIN = 128                  # fallback lane width (minimises padding)
_MAX_BLOCK_BYTES = 4 * 1024 * 1024   # 4 MiB per buffer -> 16 MiB double-buffered i/o


def _rezero_kernel(g_ref, x_ref, o_ref):
    # g_ref: (1,) scalar parameter in SMEM
    # x_ref/o_ref: (block_rows, lane) tile in VMEM
    g = g_ref[0]                                   # single SMEM load per step
    x = x_ref[...].astype(jnp.float32)

    # mish(x) = x * tanh(softplus(x)); tanh(softplus(x)) = n / (n + 2),
    # with n = e*(e+2), e = exp(x). Clamp x at 20 before exp: avoids f32
    # overflow of e^2, and for x >= 20, n/(n+2) already rounds to exactly
    # 1.0f, so no extra select is needed.
    xc = jnp.minimum(x, 20.0)
    e = jnp.exp(xc)
    n = e * (e + 2.0)
    d = n + 2.0
    r = pl.reciprocal(d, approx=True)              # EUP vrcp (free slot)
    r = r * (2.0 - d * r)                          # one Newton step -> ~f32 exact
    t = n * r                                      # tanh(softplus(x))

    o_ref[...] = (x * t * g).astype(o_ref.dtype)


def rezero_forward(x, g):
    """x: any shape (elementwise), g: (1,) -> same shape/dtype as x."""
    orig_shape = x.shape
    orig_dtype = x.dtype
    itemsize = x.dtype.itemsize
    total = 1
    for s in orig_shape:
        total *= s

    # Sublane packing for the I/O dtype: 8 (f32), 16 (bf16), 32 (int8/fp8).
    pack = max(8, 32 // itemsize)

    # Lane-dense layout; avoid any padding whenever total divides the lane width.
    if total % _LANE_WIDE == 0:
        lane = _LANE_WIDE
        padded_total = total
    elif total % _LANE_MIN == 0:
        lane = _LANE_MIN
        padded_total = total
    else:
        # Rare fallback: pad up to the next multiple of 128 lanes (one copy).
        lane = _LANE_MIN
        padded_total = -(-total // _LANE_MIN) * _LANE_MIN

    n_rows = padded_total // lane

    # Block rows: big blocks amortize the ~0.35us/step overhead; aim for at
    # least 2 grid steps so both v7x TensorCores get work; align to `pack`.
    max_rows = max(pack, (_MAX_BLOCK_BYTES // (lane * itemsize)) // pack * pack)
    half_rows = -(-n_rows // 2)
    block_rows = -(-half_rows // pack) * pack
    block_rows = max(pack, min(max_rows, block_rows))

    x_flat = jnp.ravel(x)
    if padded_total != total:
        x_flat = jnp.pad(x_flat, (0, padded_total - total))
    x2d = x_flat.reshape(n_rows, lane)

    grid = (pl.cdiv(n_rows, block_rows),)   # ragged final block is masked by Pallas

    cost = pl.CostEstimate(
        flops=12 * padded_total,
        transcendentals=2 * padded_total,
        bytes_accessed=2 * padded_total * itemsize,
    )

    out2d = pl.pallas_call(
        _rezero_kernel,
        out_shape=jax.ShapeDtypeStruct((n_rows, lane), orig_dtype),
        grid=grid,
        in_specs=[
            pl.BlockSpec(memory_space=pltpu.MemorySpace.SMEM),        # g scalar
            pl.BlockSpec((block_rows, lane), lambda i: (i, 0)),       # x tile
        ],
        out_specs=pl.BlockSpec((block_rows, lane), lambda i: (i, 0)),
        compiler_params=pltpu.CompilerParams(
            dimension_semantics=("parallel",),
            vmem_limit_bytes=32 * 1024 * 1024,
        ),
        cost_estimate=cost,
    )(g, x2d)

    out_flat = out2d.reshape(-1)
    if padded_total != total:
        out_flat = out_flat[:total]
    return out_flat.reshape(orig_shape)


def rezero_reference(x, g):
    x = x.astype(jnp.float32)
    fx = x * jnp.tanh(jnp.logaddexp(x, 0.0))
    return fx * g[0]


if __name__ == "__main__":
    key = jax.random.PRNGKey(0)
    B, C, H, W = 2, 4, 16, 16
    x = jax.random.normal(key, (B, C, H, W), dtype=jnp.float32)

    # Deterministic parameter init matching nn.Parameter(torch.zeros(1)).
    g = jnp.zeros((1,), dtype=jnp.float32)

    out = rezero_forward(x, g)
    out = jax.block_until_ready(out)

    ref = rezero_reference(x, g)
    assert out.shape == (B, C, H, W), out.shape
    assert jnp.allclose(out, ref, atol=1e-5, rtol=1e-5), "mismatch vs reference"

    # Nonzero g (as it would become during training).
    g2 = jnp.full((1,), 0.5, dtype=jnp.float32)
    out2 = jax.block_until_ready(rezero_forward(x, g2))
    ref2 = rezero_reference(x, g2)
    assert jnp.allclose(out2, ref2, atol=1e-5, rtol=1e-5), "mismatch (g=0.5)"

    # Non-divisible shape: exercises the lane=128 fallback with padding and a
    # ragged (masked) final grid block.
    x3 = jax.random.normal(jax.random.PRNGKey(1), (3, 5, 33, 17), dtype=jnp.float32)
    out3 = jax.block_until_ready(rezero_forward(x3, g2))
    ref3 = rezero_reference(x3, g2)
    assert out3.shape == x3.shape, out3.shape
    assert jnp.allclose(out3, ref3, atol=1e-5, rtol=1e-5), "mismatch (padded case)"

    # Larger shape divisible by 512: no pad / no slice path, multi-step grid.
    x4 = jax.random.normal(jax.random.PRNGKey(2), (4, 8, 64, 64), dtype=jnp.float32)
    out4 = jax.block_until_ready(rezero_forward(x4, g2))
    ref4 = rezero_reference(x4, g2)
    assert jnp.allclose(out4, ref4, atol=1e-5, rtol=1e-5), "mismatch (large case)"

    print("KERNEL_OK")
</pallas_src>

<mosaic_0001>
module attributes {stable_mosaic.version = 11 : i64} {
  func.func @_rezero_kernel(%arg0: i32, %arg1: memref<1xf32, #tpu.memory_space<smem>>, %arg2: memref<8x512xf32, #tpu.memory_space<vmem>>, %arg3: memref<8x512xf32, #tpu.memory_space<vmem>>) attributes {dimension_semantics = [#tpu.dimension_semantics<parallel>], iteration_bounds = array<i64: 1>, scalar_prefetch = 0 : i64, scratch_operands = 0 : i64, tpu.core_type = #tpu.core_type<tc>, window_params = [{transform_indices = @transform_0, window_bounds = array<i64: 1>}, {transform_indices = @transform_1, window_bounds = array<i64: 8, 512>}, {transform_indices = @transform_2, window_bounds = array<i64: 8, 512>}]} {
    %c0 = arith.constant 0 : index
    %0 = memref.load %arg1[%c0] : memref<1xf32, #tpu.memory_space<smem>>
    %c0_0 = arith.constant 0 : index
    %c0_1 = arith.constant 0 : index
    %1 = vector.load %arg2[%c0_0, %c0_1] : memref<8x512xf32, #tpu.memory_space<vmem>>, vector<8x512xf32>
    %cst = arith.constant 2.000000e+01 : f32
    %2 = vector.broadcast %cst : f32 to vector<8x512xf32>
    %3 = arith.minimumf %1, %2 : vector<8x512xf32>
    %4 = math.exp %3 : vector<8x512xf32>
    %cst_2 = arith.constant 2.000000e+00 : f32
    %5 = vector.broadcast %cst_2 : f32 to vector<8x512xf32>
    %6 = arith.addf %4, %5 : vector<8x512xf32>
    %7 = arith.mulf %4, %6 : vector<8x512xf32>
    %cst_3 = arith.constant 2.000000e+00 : f32
    %8 = vector.broadcast %cst_3 : f32 to vector<8x512xf32>
    %9 = arith.addf %7, %8 : vector<8x512xf32>
    %10 = tpu.reciprocal %9 {approx = true} : vector<8x512xf32> -> vector<8x512xf32>
    %11 = arith.mulf %9, %10 : vector<8x512xf32>
    %cst_4 = arith.constant 2.000000e+00 : f32
    %12 = vector.broadcast %cst_4 : f32 to vector<8x512xf32>
    %13 = arith.subf %12, %11 : vector<8x512xf32>
    %14 = arith.mulf %10, %13 : vector<8x512xf32>
    %15 = arith.mulf %7, %14 : vector<8x512xf32>
    %16 = arith.mulf %1, %15 : vector<8x512xf32>
    %17 = vector.broadcast %0 : f32 to vector<8x512xf32>
    %18 = arith.mulf %16, %17 : vector<8x512xf32>
    %c0_5 = arith.constant 0 : index
    %c0_6 = arith.constant 0 : index
    %19 = vector.load %arg3[%c0_5, %c0_6] : memref<8x512xf32, #tpu.memory_space<vmem>>, vector<8x512xf32>
    tpu.vector_store %arg3[%c0_5, %c0_6], %18 {strides = array<i32>} : memref<8x512xf32, #tpu.memory_space<vmem>>, vector<8x512xf32>,
    return
  }
  func.func @transform_0(%arg0: i32) -> i32 {
    %c0_i32 = arith.constant 0 : i32
    %c0_i32_0 = arith.constant 0 : i32
    return %c0_i32 : i32
  }
  func.func @transform_1(%arg0: i32) -> (i32, i32) {
    %c0_i32 = arith.constant 0 : i32
    %c0_i32_0 = arith.constant 0 : i32
    return %arg0, %c0_i32 : i32, i32
  }
  func.func @transform_2(%arg0: i32) -> (i32, i32) {
    %c0_i32 = arith.constant 0 : i32
    %c0_i32_0 = arith.constant 0 : i32
    return %arg0, %c0_i32 : i32, i32
  }
}

</mosaic_0001>

<bundles_post_ra>
// kernel: tpu_custom_call.1
= control target key start
LH: loop header
LB: loop body
LE: loop exit
PB: predicated region body
PF: predicated region fallthrough
CT: control target
= control target key end

     0   :  { %8 = vsyncpa [#allocation4], 0  ;;  %s226_s0 = inlined_call_operand.<no memory space> [shape: f32[1], index: 0, kind: input, shape index: {}]   ;;  %s227_s1 = inlined_call_operand.hbm [shape: f32[4,512], index: 1, kind: input, shape index: {}]   ;;  %s228_s2 = inlined_call_operand.hbm [shape: f32[4,512], index: 2, kind: output, shape index: {}]  }
   0x1   :  { %9 = vsyncpa [#allocation5], 0 }
   0x2   :  { %16 = vsyncadd [#allocation4], 256  ;;  %s174_s9 = smov [#allocation3]   ;;  %s126_s13 = scalar_lea.hbm %s227_s1, 256 }
   0x3   :  { %s17_s10 = sshll.u32 %s174_s9, 4  ;;  %p127_p0 = scmp.ne.s32.totalorder %s227_s1, %s126_s13  ;;  %s18_s10 = int_to_ptr.vmem [resolvable:$true] %s17_s10 }
   0x4   :  { %p130_p1 = scmp.lt.u32.totalorder %s126_s13, %s227_s1 }
   0x6   :  { %p132_p2 = pnand %p130_p1, %p127_p0 }
   0x8   :  { %135 = shalt.err (!%p132_p2)
}
   0x9   :  { %s136_s18 = scalar_lea.vmem %s18_s10, 256  ;;  %s140_s19 = scalar_lea.vmem %s18_s10, 512 }
   0xa   :  { %p137_p3 = scmp.ne.s32.totalorder %s18_s10, %s136_s18  ;;  %p141_p4 = scmp.lt.s32.totalorder %s18_s10, %s18_s10 }
   0xb   :  { %p142_p5 = scmp.lt.s32.totalorder %s140_s19, %s136_s18 }
   0xd   :  { %p143_p6 = por %p142_p5, %p141_p4 }
   0xf   :  { %p144_p7 = pnand %p143_p6, %p137_p3 }
  0x11   :  { %147 = shalt.err (!%p144_p7)
}
  0x12   :  { %s175_s20 = smov 256   ;;  %s176_s21 = smov 16  }
  0x13   :  { %23 = dma.hbm_to_vmem [thread:$0]  %s227_s1, 256, %s18_s10, [#allocation4], %s175_s20, %s175_s20, %s176_s21  }
  0x14   :  { %170 = dma.done.wait [#allocation4], 512  }
  0x15   :  { %171 = vsyncadd [#allocation4], 4294966784  ;;  %v28_v0 = vld [vmem:[#allocation3] sm:$0xff]  ;;  %v29_v1 = vld [vmem:[#allocation3 + $0x8] sm:$0xff]  ;;  %v80_v44 = vstv %s226_s0 }
  0x16   :  { %v30_v2 = vld [vmem:[#allocation3 + $0x10] sm:$0xff]  ;;  %v32_v3 = vmin.f32 %v28_v0, 20.0  ;;  %v33_v4 = vmin.f32 %v29_v1, 20.0  ;;  %v31_v6 = vld [vmem:[#allocation3 + $0x18] sm:$0xff] }
  0x17   :  { %v34_v5 = vmin.f32 %v30_v2, 20.0  ;;  %v35_v7 = vmin.f32 %v31_v6, 20.0 }
  0x18   :  { %v36_v8 = vmul.f32 1.442695, %v32_v3  ;;  %v38_v9 = vmul.f32 1.442695, %v33_v4 }
  0x19   :  { %v40_v10 = vmul.f32 1.442695, %v34_v5  ;;  %v42_v11 = vmul.f32 1.442695, %v35_v7 }
  0x1a   :  { %110 = vpow2.f32 %v36_v8 }
  0x1b   :  { %112 = vpow2.f32 %v38_v9 }
  0x1c   :  { %114 = vpow2.f32 %v40_v10 }
  0x1d   :  { %116 = vpow2.f32 %v42_v11 }
  0x24   :  { %v111_v12 = vpop.eup %110 }
  0x25   :  { %v113_v13 = vpop.eup %112  ;;  %v44_v14 = vadd.f32 2.0, %v111_v12 }
  0x26   :  { %v115_v15 = vpop.eup %114  ;;  %v45_v16 = vadd.f32 2.0, %v113_v13 }
  0x27   :  { %v117_v17 = vpop.eup %116  ;;  %v48_v18 = vmul.f32 %v111_v12, %v44_v14  ;;  %v46_v19 = vadd.f32 2.0, %v115_v15 }
  0x28   :  { %v49_v20 = vmul.f32 %v113_v13, %v45_v16  ;;  %v47_v21 = vadd.f32 2.0, %v117_v17 }
  0x29   :  { %v52_v22 = vadd.f32 2.0, %v48_v18  ;;  %v50_v23 = vmul.f32 %v115_v15, %v46_v19 }
  0x2a   :  { %v53_v24 = vadd.f32 2.0, %v49_v20  ;;  %v51_v25 = vmul.f32 %v117_v17, %v47_v21 }
  0x2b   :  { %118 = vrcp.f32 %v52_v22  ;;  %v54_v26 = vadd.f32 2.0, %v50_v23 }
  0x2c   :  { %120 = vrcp.f32 %v53_v24  ;;  %v55_v27 = vadd.f32 2.0, %v51_v25 }
  0x2d   :  { %122 = vrcp.f32 %v54_v26 }
  0x2e   :  { %124 = vrcp.f32 %v55_v27 }
  0x35   :  { %v119_v28 = vpop.eup %118 }
  0x36   :  { %v121_v29 = vpop.eup %120  ;;  %v60_v30 = vmul.f32 %v119_v28, %v52_v22 }
  0x37   :  { %v123_v31 = vpop.eup %122  ;;  %v61_v32 = vmul.f32 %v121_v29, %v53_v24 }
  0x38   :  { %v125_v33 = vpop.eup %124  ;;  %v64_v34 = vsub.f32 2.0, %v60_v30  ;;  %v62_v35 = vmul.f32 %v123_v31, %v54_v26 }
  0x39   :  { %v65_v36 = vsub.f32 2.0, %v61_v32  ;;  %v63_v37 = vmul.f32 %v125_v33, %v55_v27 }
  0x3a   :  { %v68_v38 = vmul.f32 %v119_v28, %v64_v34  ;;  %v66_v39 = vsub.f32 2.0, %v62_v35 }
  0x3b   :  { %v69_v40 = vmul.f32 %v121_v29, %v65_v36  ;;  %v67_v41 = vsub.f32 2.0, %v63_v37 }
  0x3c   :  { %v72_v42 = vmul.f32 %v68_v38, %v48_v18  ;;  %v70_v43 = vmul.f32 %v123_v31, %v66_v39 }
  0x3d   :  { %v73_v45 = vmul.f32 %v69_v40, %v49_v20  ;;  %v71_v46 = vmul.f32 %v125_v33, %v67_v41 }
  0x3e   :  { %v76_v47 = vmul.f32 %v72_v42, %v28_v0  ;;  %v74_v48 = vmul.f32 %v70_v43, %v50_v23 }
  0x3f   :  { %v77_v49 = vmul.f32 %v73_v45, %v29_v1  ;;  %v75_v50 = vmul.f32 %v71_v46, %v51_v25 }
  0x40   :  { %v81_v51 = vmul.f32 %v80_v44, %v76_v47  ;;  %v78_v52 = vmul.f32 %v74_v48, %v30_v2 }
  0x41   :  { %v82_v53 = vmul.f32 %v80_v44, %v77_v49  ;;  %v79_v54 = vmul.f32 %v75_v50, %v31_v6 }
  0x42   :  { %85 = vst [vmem:[#allocation6] sm:$0xff] %v81_v51  ;;  %v83_v55 = vmul.f32 %v80_v44, %v78_v52 }
  0x43   :  { %86 = vst [vmem:[#allocation6 + $0x8] sm:$0xff] %v82_v53  ;;  %v84_v56 = vmul.f32 %v80_v44, %v79_v54 }
  0x44   :  { %87 = vst [vmem:[#allocation6 + $0x10] sm:$0xff] %v83_v55 }
  0x45   :  { %88 = vst [vmem:[#allocation6 + $0x18] sm:$0xff] %v84_v56 }
  0x46   :  { %93 = vsyncadd [#allocation5], 256  ;;  %s177_s25 = smov [#allocation6]  }
  0x47   :  { %s94_s26 = sshll.u32 %s177_s25, 4  ;;  %s95_s26 = int_to_ptr.vmem [resolvable:$true] %s94_s26 }
  0x48   :  { %s148_s0 = scalar_lea.vmem %s95_s26, 256  ;;  %s152_s27 = scalar_lea.vmem %s95_s26, 512 }
  0x49   :  { %p149_p8 = scmp.ne.s32.totalorder %s95_s26, %s148_s0  ;;  %p153_p9 = scmp.lt.s32.totalorder %s95_s26, %s95_s26 }
  0x4a   :  { %p154_p10 = scmp.lt.s32.totalorder %s152_s27, %s148_s0 }
  0x4c   :  { %p155_p11 = por %p154_p10, %p153_p9 }
  0x4e   :  { %p156_p12 = pnand %p155_p11, %p149_p8 }
  0x50   :  { %159 = shalt.err (!%p156_p12)
}
  0x51   :  { %s160_s30 = scalar_lea.hbm %s228_s2, 256 }
  0x52   :  { %p161_p13 = scmp.ne.s32.totalorder %s228_s2, %s160_s30  ;;  %p164_p0 = scmp.lt.u32.totalorder %s160_s30, %s228_s2 }
  0x54   :  { %p166_p1 = pnand %p164_p0, %p161_p13 }
  0x56   :  { %169 = shalt.err (!%p166_p1)
}
  0x57   :  { %100 = dma.vmem_to_hbm [thread:$0]  %s95_s26, 256, %s228_s2, [#allocation5], %s175_s20, %s175_s20, %s176_s21  }
  0x58   :  { %172 = dma.done.wait [#allocation5], 512  }
  0x59   :  { %173 = vsyncadd [#allocation5], 4294966784 }
  0x5a   :  { %104 = vsyncpa [#allocation4], 1 }
  0x5b   :  { %105 = vsyncpa [#allocation5], 1 }

</bundles_post_ra>
